<compile_context>
chip_gen: v7x
topology: tpu7x:2x2x1
jax: 0.10.0
libtpu: 0.0.40
codegen_flags: <defaults>
</compile_context>

<pallas_src>
import jax
import jax.numpy as jnp
from jax import lax
from jax.experimental import pallas as pl
from jax.experimental.pallas import tpu as pltpu

_BN_EPS = 1e-5
# Safe on v5e/v6e (128 MiB physical) and v7x (64 MiB physical).
_VMEM_LIMIT_BYTES = 48 * 1024 * 1024
_TARGET_BLOCK_BYTES = 4 << 20  # ~4 MiB x-block -> ~16 MiB live in apply pass


def _pick_spatial_tile(rows, s, target_bytes=_TARGET_BLOCK_BYTES):
    """Lane-axis tile TS: either the full extent (always layout-legal) or a
    multiple of 128 sized so an (rows, TS) f32 block is ~target_bytes."""
    if s < 128 or (s <= 512 and rows * s * 4 <= target_bytes):
        return s  # single full-extent block
    ts = (target_bytes // max(rows * 4, 1)) // 128 * 128
    ts = max(128, ts)
    return min(ts, (s // 128) * 128)


def _make_stats_kernel(count, s_total, ts, needs_mask, eps):
    """Pass 1: accumulate per-channel sum / sum-of-squares over spatial tiles,
    then fold BN + |gamma| normalization into per-channel (scale, bias)."""
    inv_count = 1.0 / float(count)

    def stats_kernel(x_ref, gamma_ref, beta_ref, scale_ref, bias_ref,
                     acc_sum, acc_sq):
        @pl.when(pl.program_id(0) == 0)
        def _init():
            acc_sum[...] = jnp.zeros_like(acc_sum)
            acc_sq[...] = jnp.zeros_like(acc_sq)

        x = x_ref[...]                                            # (N, C, TS)
        if needs_mask:
            # Zero out lanes past the true spatial extent on boundary tiles.
            col = pl.program_id(0) * ts + lax.broadcasted_iota(
                jnp.int32, (1, 1, ts), 2)
            x = jnp.where(col < s_total, x, 0.0)

        # Single read of x: fused sum and sum-of-squares (lane reduce, then N).
        acc_sum[...] += jnp.sum(jnp.sum(x, axis=2, keepdims=True), axis=0)
        acc_sq[...] += jnp.sum(jnp.sum(x * x, axis=2, keepdims=True), axis=0)

        @pl.when(pl.program_id(0) == pl.num_programs(0) - 1)
        def _finalize():
            mean = acc_sum[...] * inv_count                       # (C, 1)
            var = jnp.maximum(acc_sq[...] * inv_count - mean * mean, 0.0)
            gamma = gamma_ref[...]                                # (C, 1)
            beta = beta_ref[...]                                  # (C, 1)
            inv_std = lax.rsqrt(var + eps)                        # EUP
            abs_g = jnp.abs(gamma)
            # Exact reciprocal: runs once per call, zero perf impact.
            w_bn = abs_g / jnp.sum(abs_g)
            g_scaled = gamma * inv_std
            # y * w_bn == x * scale + bias  with:
            scale_ref[...] = g_scaled * w_bn
            bias_ref[...] = (beta - mean * g_scaled) * w_bn

    return stats_kernel


def _apply_kernel(x_ref, scale_ref, bias_ref, o_ref):
    """Pass 2: out = sigmoid(x*scale + bias) * x  (per-row scale/bias)."""
    x = x_ref[...]                                   # (N*C, TS)  lane-dense
    o_ref[...] = jax.nn.sigmoid(x * scale_ref[...] + bias_ref[...]) * x


def nam_block(x_nchw, gamma, beta):
    """x_nchw: (N, C, H, W); gamma, beta: (C,). Returns (N, C, H, W) f32."""
    n, c, h, w = x_nchw.shape
    s = h * w
    rows = n * c

    xf = x_nchw.astype(jnp.float32)
    x3 = xf.reshape(n, c, s)        # free views of contiguous NCHW
    x2 = xf.reshape(rows, s)
    g = gamma.reshape(c, 1).astype(jnp.float32)
    b = beta.reshape(c, 1).astype(jnp.float32)

    ts = _pick_spatial_tile(rows, s)
    grid = (pl.cdiv(s, ts),)
    needs_mask = (s % ts) != 0

    # ---- Pass 1: per-channel stats -> folded (scale, bias) ------------------
    scale_c, bias_c = pl.pallas_call(
        _make_stats_kernel(count=n * s, s_total=s, ts=ts,
                           needs_mask=needs_mask, eps=_BN_EPS),
        out_shape=(jax.ShapeDtypeStruct((c, 1), jnp.float32),
                   jax.ShapeDtypeStruct((c, 1), jnp.float32)),
        grid_spec=pltpu.PrefetchScalarGridSpec(
            num_scalar_prefetch=0,
            grid=grid,
            in_specs=[
                pl.BlockSpec((n, c, ts), lambda i: (0, 0, i)),
                pl.BlockSpec((c, 1), lambda i: (0, 0)),
                pl.BlockSpec((c, 1), lambda i: (0, 0)),
            ],
            out_specs=(
                pl.BlockSpec((c, 1), lambda i: (0, 0)),
                pl.BlockSpec((c, 1), lambda i: (0, 0)),
            ),
            scratch_shapes=[pltpu.VMEM((c, 1), jnp.float32),
                            pltpu.VMEM((c, 1), jnp.float32)],
        ),
        compiler_params=pltpu.CompilerParams(
            dimension_semantics=("arbitrary",),          # reduction axis
            vmem_limit_bytes=_VMEM_LIMIT_BYTES,
        ),
    )(x3, g, b)

    # Expand the tiny per-channel vectors to per-(n,c) rows so pass 2 can use
    # the sublane-dense (N*C, S) view (no sublane padding when C % 8 != 0).
    # This is rows*4 bytes of traffic -- negligible.
    scale_r = jnp.broadcast_to(scale_c[None], (n, c, 1)).reshape(rows, 1)
    bias_r = jnp.broadcast_to(bias_c[None], (n, c, 1)).reshape(rows, 1)

    # ---- Pass 2: elementwise gate * residual (parallel over spatial tiles) --
    out2 = pl.pallas_call(
        _apply_kernel,
        out_shape=jax.ShapeDtypeStruct((rows, s), jnp.float32),
        grid_spec=pltpu.PrefetchScalarGridSpec(
            num_scalar_prefetch=0,
            grid=grid,
            in_specs=[
                pl.BlockSpec((rows, ts), lambda i: (0, i)),
                pl.BlockSpec((rows, 1), lambda i: (0, 0)),
                pl.BlockSpec((rows, 1), lambda i: (0, 0)),
            ],
            out_specs=pl.BlockSpec((rows, ts), lambda i: (0, i)),
        ),
        compiler_params=pltpu.CompilerParams(
            dimension_semantics=("parallel",),           # megacore-friendly
            vmem_limit_bytes=_VMEM_LIMIT_BYTES,
        ),
    )(x2, scale_r, bias_r)

    # Free reshape back to NCHW.
    return out2.reshape(n, c, h, w)


def _reference(x_nchw, gamma, beta):
    # Pure-JAX reference mirroring the PyTorch forward (training-mode BN).
    x = x_nchw.astype(jnp.float32)
    mean = jnp.mean(x, axis=(0, 2, 3), keepdims=True)
    var = jnp.mean((x - mean) ** 2, axis=(0, 2, 3), keepdims=True)
    g = gamma.reshape(1, -1, 1, 1)
    b = beta.reshape(1, -1, 1, 1)
    y = (x - mean) / jnp.sqrt(var + _BN_EPS) * g + b
    w_bn = jnp.abs(g) / jnp.sum(jnp.abs(gamma))
    return jax.nn.sigmoid(y * w_bn) * x


if __name__ == "__main__":
    key = jax.random.PRNGKey(0)
    kx, kg, kb = jax.random.split(key, 3)

    N, C, H, W = 2, 4, 16, 16
    x = jax.random.normal(kx, (N, C, H, W), dtype=jnp.float32)
    # Random BN parameters exercise the |gamma| normalization path.
    gamma = 1.0 + 0.1 * jax.random.normal(kg, (C,), dtype=jnp.float32)
    beta = 0.1 * jax.random.normal(kb, (C,), dtype=jnp.float32)

    out = jax.block_until_ready(nam_block(x, gamma, beta))

    ref = _reference(x, gamma, beta)
    assert out.shape == (N, C, H, W)
    assert jnp.allclose(out, ref, atol=5e-5, rtol=5e-5), "mismatch vs reference"

    print("KERNEL_OK")
</pallas_src>

<mosaic_0001>
module attributes {stable_mosaic.version = 11 : i64} {
  func.func @stats_kernel(%arg0: i32, %arg1: memref<2x4x256xf32, #tpu.memory_space<vmem>>, %arg2: memref<4x1xf32, #tpu.memory_space<vmem>>, %arg3: memref<4x1xf32, #tpu.memory_space<vmem>>, %arg4: memref<4x1xf32, #tpu.memory_space<vmem>>, %arg5: memref<4x1xf32, #tpu.memory_space<vmem>>, %arg6: memref<4x1xf32, #tpu.memory_space<vmem>>, %arg7: memref<4x1xf32, #tpu.memory_space<vmem>>) attributes {dimension_semantics = [#tpu.dimension_semantics<arbitrary>], iteration_bounds = array<i64: 1>, scalar_prefetch = 0 : i64, scratch_operands = 2 : i64, tpu.core_type = #tpu.core_type<tc>, window_params = [{transform_indices = @transform_0, window_bounds = array<i64: 2, 4, 256>}, {pipeline_mode = #tpu.pipeline_mode<synchronous>, transform_indices = @transform_1, window_bounds = array<i64: 4, 1>}, {pipeline_mode = #tpu.pipeline_mode<synchronous>, transform_indices = @transform_2, window_bounds = array<i64: 4, 1>}, {pipeline_mode = #tpu.pipeline_mode<synchronous>, transform_indices = @transform_3, window_bounds = array<i64: 4, 1>}, {pipeline_mode = #tpu.pipeline_mode<synchronous>, transform_indices = @transform_4, window_bounds = array<i64: 4, 1>}]} {
    %c0_i32 = arith.constant 0 : i32
    %0 = arith.cmpi eq, %arg0, %c0_i32 : i32
    %1 = arith.extui %0 : i1 to i32
    %c0_i32_0 = arith.constant 0 : i32
    %2 = arith.cmpi ne, %1, %c0_i32_0 : i32
    scf.if %2 {
      %cst_16 = arith.constant 0.000000e+00 : f32
      %20 = vector.broadcast %cst_16 : f32 to vector<4x1xf32>
      %c0_17 = arith.constant 0 : index
      %c0_18 = arith.constant 0 : index
      %21 = vector.load %arg6[%c0_17, %c0_18] : memref<4x1xf32, #tpu.memory_space<vmem>>, vector<4x1xf32>
      tpu.vector_store %arg6[%c0_17, %c0_18], %20 {strides = array<i32>} : memref<4x1xf32, #tpu.memory_space<vmem>>, vector<4x1xf32>,
      %cst_19 = arith.constant 0.000000e+00 : f32
      %22 = vector.broadcast %cst_19 : f32 to vector<4x1xf32>
      %c0_20 = arith.constant 0 : index
      %c0_21 = arith.constant 0 : index
      %23 = vector.load %arg7[%c0_20, %c0_21] : memref<4x1xf32, #tpu.memory_space<vmem>>, vector<4x1xf32>
      tpu.vector_store %arg7[%c0_20, %c0_21], %22 {strides = array<i32>} : memref<4x1xf32, #tpu.memory_space<vmem>>, vector<4x1xf32>,
    } else {
    }
    %c0 = arith.constant 0 : index
    %c0_1 = arith.constant 0 : index
    %c0_2 = arith.constant 0 : index
    %3 = vector.load %arg1[%c0, %c0_1, %c0_2] : memref<2x4x256xf32, #tpu.memory_space<vmem>>, vector<2x4x256xf32>
    %c0_3 = arith.constant 0 : index
    %c0_4 = arith.constant 0 : index
    %4 = vector.load %arg6[%c0_3, %c0_4] : memref<4x1xf32, #tpu.memory_space<vmem>>, vector<4x1xf32>
    %cst = arith.constant dense<0.000000e+00> : vector<2x4xf32>
    %5 = vector.multi_reduction <add>, %3, %cst [2] : vector<2x4x256xf32> to vector<2x4xf32>
    %6 = vector.shape_cast %5 : vector<2x4xf32> to vector<2x4x1xf32>
    %cst_5 = arith.constant dense<0.000000e+00> : vector<4x1xf32>
    %7 = vector.multi_reduction <add>, %6, %cst_5 [0] : vector<2x4x1xf32> to vector<4x1xf32>
    %8 = arith.addf %4, %7 : vector<4x1xf32>
    %c0_6 = arith.constant 0 : index
    %c0_7 = arith.constant 0 : index
    %9 = vector.load %arg6[%c0_6, %c0_7] : memref<4x1xf32, #tpu.memory_space<vmem>>, vector<4x1xf32>
    tpu.vector_store %arg6[%c0_6, %c0_7], %8 {strides = array<i32>} : memref<4x1xf32, #tpu.memory_space<vmem>>, vector<4x1xf32>,
    %c0_8 = arith.constant 0 : index
    %c0_9 = arith.constant 0 : index
    %10 = vector.load %arg7[%c0_8, %c0_9] : memref<4x1xf32, #tpu.memory_space<vmem>>, vector<4x1xf32>
    %11 = arith.mulf %3, %3 : vector<2x4x256xf32>
    %cst_10 = arith.constant dense<0.000000e+00> : vector<2x4xf32>
    %12 = vector.multi_reduction <add>, %11, %cst_10 [2] : vector<2x4x256xf32> to vector<2x4xf32>
    %13 = vector.shape_cast %12 : vector<2x4xf32> to vector<2x4x1xf32>
    %cst_11 = arith.constant dense<0.000000e+00> : vector<4x1xf32>
    %14 = vector.multi_reduction <add>, %13, %cst_11 [0] : vector<2x4x1xf32> to vector<4x1xf32>
    %15 = arith.addf %10, %14 : vector<4x1xf32>
    %c0_12 = arith.constant 0 : index
    %c0_13 = arith.constant 0 : index
    %16 = vector.load %arg7[%c0_12, %c0_13] : memref<4x1xf32, #tpu.memory_space<vmem>>, vector<4x1xf32>
    tpu.vector_store %arg7[%c0_12, %c0_13], %15 {strides = array<i32>} : memref<4x1xf32, #tpu.memory_space<vmem>>, vector<4x1xf32>,
    %c0_i32_14 = arith.constant 0 : i32
    %17 = arith.cmpi eq, %arg0, %c0_i32_14 : i32
    %18 = arith.extui %17 : i1 to i32
    %c0_i32_15 = arith.constant 0 : i32
    %19 = arith.cmpi ne, %18, %c0_i32_15 : i32
    scf.if %19 {
      %c0_16 = arith.constant 0 : index
      %c0_17 = arith.constant 0 : index
      %20 = vector.load %arg6[%c0_16, %c0_17] : memref<4x1xf32, #tpu.memory_space<vmem>>, vector<4x1xf32>
      %cst_18 = arith.constant 0.001953125 : f32
      %21 = vector.broadcast %cst_18 : f32 to vector<4x1xf32>
      %22 = arith.mulf %20, %21 : vector<4x1xf32>
      %c0_19 = arith.constant 0 : index
      %c0_20 = arith.constant 0 : index
      %23 = vector.load %arg7[%c0_19, %c0_20] : memref<4x1xf32, #tpu.memory_space<vmem>>, vector<4x1xf32>
      %cst_21 = arith.constant 0.001953125 : f32
      %24 = vector.broadcast %cst_21 : f32 to vector<4x1xf32>
      %25 = arith.mulf %23, %24 : vector<4x1xf32>
      %26 = arith.mulf %22, %22 : vector<4x1xf32>
      %27 = arith.subf %25, %26 : vector<4x1xf32>
      %cst_22 = arith.constant 0.000000e+00 : f32
      %28 = vector.broadcast %cst_22 : f32 to vector<4x1xf32>
      %29 = arith.maximumf %27, %28 : vector<4x1xf32>
      %c0_23 = arith.constant 0 : index
      %c0_24 = arith.constant 0 : index
      %30 = vector.load %arg2[%c0_23, %c0_24] : memref<4x1xf32, #tpu.memory_space<vmem>>, vector<4x1xf32>
      %c0_25 = arith.constant 0 : index
      %c0_26 = arith.constant 0 : index
      %31 = vector.load %arg3[%c0_25, %c0_26] : memref<4x1xf32, #tpu.memory_space<vmem>>, vector<4x1xf32>
      %cst_27 = arith.constant 9.99999974E-6 : f32
      %32 = vector.broadcast %cst_27 : f32 to vector<4x1xf32>
      %33 = arith.addf %29, %32 : vector<4x1xf32>
      %34 = math.rsqrt %33 : vector<4x1xf32>
      %35 = math.absf %30 : vector<4x1xf32>
      %36 = vector.shape_cast %35 : vector<4x1xf32> to vector<1x4x1xf32>
      %cst_28 = arith.constant dense<0.000000e+00> : vector<1xf32>
      %37 = vector.multi_reduction <add>, %36, %cst_28 [1, 2] : vector<1x4x1xf32> to vector<1xf32>
      %38 = vector.shape_cast %37 : vector<1xf32> to vector<1x1x1xf32>
      %39 = vector.extract %38[0, 0, 0] : f32 from vector<1x1x1xf32>
      %40 = vector.broadcast %39 : f32 to vector<4x1xf32>
      %41 = arith.divf %35, %40 : vector<4x1xf32>
      %42 = arith.mulf %30, %34 : vector<4x1xf32>
      %43 = arith.mulf %42, %41 : vector<4x1xf32>
      %c0_29 = arith.constant 0 : index
      %c0_30 = arith.constant 0 : index
      %44 = vector.load %arg4[%c0_29, %c0_30] : memref<4x1xf32, #tpu.memory_space<vmem>>, vector<4x1xf32>
      tpu.vector_store %arg4[%c0_29, %c0_30], %43 {strides = array<i32>} : memref<4x1xf32, #tpu.memory_space<vmem>>, vector<4x1xf32>,
      %45 = arith.mulf %22, %42 : vector<4x1xf32>
      %46 = arith.subf %31, %45 : vector<4x1xf32>
      %47 = arith.mulf %46, %41 : vector<4x1xf32>
      %c0_31 = arith.constant 0 : index
      %c0_32 = arith.constant 0 : index
      %48 = vector.load %arg5[%c0_31, %c0_32] : memref<4x1xf32, #tpu.memory_space<vmem>>, vector<4x1xf32>
      tpu.vector_store %arg5[%c0_31, %c0_32], %47 {strides = array<i32>} : memref<4x1xf32, #tpu.memory_space<vmem>>, vector<4x1xf32>,
    } else {
    }
    return
  }
  func.func @transform_0(%arg0: i32) -> (i32, i32, i32) {
    %c0_i32 = arith.constant 0 : i32
    %c0_i32_0 = arith.constant 0 : i32
    %c0_i32_1 = arith.constant 0 : i32
    return %c0_i32, %c0_i32_0, %arg0 : i32, i32, i32
  }
  func.func @transform_1(%arg0: i32) -> (i32, i32) {
    %c0_i32 = arith.constant 0 : i32
    %c0_i32_0 = arith.constant 0 : i32
    %c0_i32_1 = arith.constant 0 : i32
    return %c0_i32, %c0_i32_0 : i32, i32
  }
  func.func @transform_2(%arg0: i32) -> (i32, i32) {
    %c0_i32 = arith.constant 0 : i32
    %c0_i32_0 = arith.constant 0 : i32
    %c0_i32_1 = arith.constant 0 : i32
    return %c0_i32, %c0_i32_0 : i32, i32
  }
  func.func @transform_3(%arg0: i32) -> (i32, i32) {
    %c0_i32 = arith.constant 0 : i32
    %c0_i32_0 = arith.constant 0 : i32
    %c0_i32_1 = arith.constant 0 : i32
    return %c0_i32, %c0_i32_0 : i32, i32
  }
  func.func @transform_4(%arg0: i32) -> (i32, i32) {
    %c0_i32 = arith.constant 0 : i32
    %c0_i32_0 = arith.constant 0 : i32
    %c0_i32_1 = arith.constant 0 : i32
    return %c0_i32, %c0_i32_0 : i32, i32
  }
}

</mosaic_0001>

<bundles_post_ra>
// kernel: tpu_custom_call.1
= control target key start
LH: loop header
LB: loop body
LE: loop exit
PB: predicated region body
PF: predicated region fallthrough
CT: control target
= control target key end

     0   :  { %10 = vsyncpa [#allocation5], 0  ;;  %s167_s15 = smov [#allocation4]   ;;  %s247_s0 = inlined_call_operand.hbm [shape: f32[2,4,256], index: 0, kind: input, shape index: {}]   ;;  %s248_s1 = inlined_call_operand.vmem [shape: f32[4,1], index: 1, kind: input, shape index: {}]   ;;  %s249_s2 = inlined_call_operand.vmem [shape: f32[4,1], index: 2, kind: input, shape index: {}]   ;;  %s250_s3 = inlined_call_operand.vmem [shape: f32[4,1], index: 3, kind: output, shape index: {0}]   ;;  %s251_s4 = inlined_call_operand.vmem [shape: f32[4,1], index: 4, kind: output, shape index: {1}]  }
   0x1   :  { %s16_s16 = sshll.u32 %s167_s15, 4  ;;  %s143_s19 = scalar_lea.hbm %s247_s0, 256  ;;  %s17_s16 = int_to_ptr.vmem [resolvable:$true] %s16_s16 }
   0x2   :  { %p144_p0 = scmp.ne.s32.totalorder %s247_s0, %s143_s19  ;;  %p147_p1 = scmp.lt.u32.totalorder %s143_s19, %s247_s0 }
   0x4   :  { %p149_p2 = pnand %p147_p1, %p144_p0 }
   0x6   :  { %152 = shalt.err (!%p149_p2)
}
   0x7   :  { %s153_s24 = scalar_lea.vmem %s17_s16, 256  ;;  %p158_p4 = scmp.lt.s32.totalorder %s17_s16, %s17_s16 }
   0x8   :  { %p154_p3 = scmp.ne.s32.totalorder %s17_s16, %s153_s24  ;;  %p159_p5 = scmp.lt.s32.totalorder %s153_s24, %s153_s24 }
   0xa   :  { %p160_p6 = por %p159_p5, %p158_p4 }
   0xc   :  { %p161_p7 = pnand %p160_p6, %p154_p3 }
   0xe   :  { %164 = shalt.err (!%p161_p7)
}
   0xf   :  { %s168_s25 = smov 128   ;;  %s169_s26 = smov 8  }
  0x10   :  { %22 = dma.hbm_to_vmem [thread:$0]  %s247_s0, 256, %s17_s16, [#allocation5], %s168_s25, %s168_s25, %s169_s26  }
  0x11   :  { %165 = dma.done.wait [#allocation5], 256  }
  0x12   :  { %166 = vsyncadd [#allocation5], 4294967040  ;;  %vm46_vm0 = vcmask 1043456   ;;  %vm34_vm1 = vcmask 3072   ;;  %v211_v0 = vld [vmem:[%s248_s1] sm:$0xf] }
  0x13   :  { %v38_v1 = vld [vmem:[#allocation4 + $0x8] sm:$0xff]  ;;  %v37_v2 = vld [vmem:[#allocation4] sm:$0xff]  ;;  %v101_v3 = vand.u32 2147483647, %v211_v0  ;;  %v170_v23 = vmov 0.0  }
  0x14   :  { %v43_v4 = vcombine.high %v38_v1, %v38_v1  ;;  %v52_v5 = vsel %vm46_vm0, %v38_v1, 0.0  ;;  %v42_v6 = vcombine.high %v37_v2, %v37_v2  ;;  %v47_v7 = vsel %vm46_vm0, %v37_v2, 0.0  ;;  %35 = vst.msk [vmem:[#allocation2] sm:$0xf] %vm34_vm1, %v170_v23  ;;  %36 = vst.msk [vmem:[#allocation3] sm:$0xf] %vm34_vm1, %v170_v23 }
  0x15   :  { %v64_v8 = vmul.f32 %v37_v2, %v37_v2  ;;  %v65_v9 = vmul.f32 %v38_v1, %v38_v1  ;;  %v102_v10 = vsel %vm34_vm1, %v101_v3, 0.0  ;;  %v98_v57 = vld [vmem:[%s249_s2] sm:$0xf] }
  0x16   :  { %v53_v11 = vsel %vm46_vm0, %v43_v4, 0.0  ;;  %v48_v12 = vsel %vm46_vm0, %v42_v6, 0.0  ;;  %103 = vadd.xlane.f32.xlu0 %v102_v10 }
  0x17   :  { %v54_v13 = vadd.f32 %v53_v11, %v52_v5  ;;  %v49_v14 = vadd.f32 %v48_v12, %v47_v7  ;;  %v68_v15 = vcombine.high %v64_v8, %v64_v8  ;;  %v72_v16 = vsel %vm46_vm0, %v64_v8, 0.0 }
  0x18   :  { %v69_v17 = vcombine.high %v65_v9, %v65_v9  ;;  %v77_v18 = vsel %vm46_vm0, %v65_v9, 0.0 }
  0x19   :  { %55 = vadd.xlane.f32.xlu1 %v54_v13  ;;  %v73_v19 = vsel %vm46_vm0, %v68_v15, 0.0 }
  0x1a   :  { %v74_v20 = vadd.f32 %v73_v19, %v72_v16  ;;  %v78_v21 = vsel %vm46_vm0, %v69_v17, 0.0  ;;  %50 = vadd.xlane.f32.xlu0 %v49_v14 }
  0x1b   :  { %v79_v22 = vadd.f32 %v78_v21, %v77_v18  ;;  %v39_v31 = vld [vmem:[#allocation2] sm:$0xf]  ;;  %v63_v40 = vld [vmem:[#allocation3] sm:$0xf] }
  0x1d   :  { %75 = vadd.xlane.f32.xlu1 %v74_v20 }
  0x1e   :  { %80 = vadd.xlane.f32.xlu0 %v79_v22 }
  0xa3   :  { %v104_v24 = vpop.xlane.xlu0 %103 }
  0xa4   :  { %v105_v25 = vrot.slane %v104_v24, 4 }
  0xa6   :  { %v56_v26 = vpop.xlane.xlu1 %55  ;;  %v106_v27 = vadd.f32 %v105_v25, %v104_v24 }
  0xa7   :  { %v58_v28 = vsel %vm46_vm0, %v56_v26, 0.0  ;;  %v51_v29 = vpop.xlane.xlu0 %50 }
  0xa8   :  { %v107_v30 = vrot.slane %v106_v27, 2  ;;  %v57_v32 = vsel %vm46_vm0, %v51_v29, 0.0 }
  0xa9   :  { %v59_v33 = vadd.f32 %v58_v28, %v57_v32 }
  0xaa   :  { %v76_v34 = vpop.xlane.xlu1 %75  ;;  %v108_v35 = vadd.f32 %v107_v30, %v106_v27 }
  0xab   :  { %v82_v36 = vsel %vm46_vm0, %v76_v34, 0.0  ;;  %v60_v37 = vadd.f32 %v59_v33, %v39_v31  ;;  %v81_v38 = vpop.xlane.xlu0 %80 }
  0xac   :  { %v109_v39 = vrot.slane %v108_v35, 1  ;;  %v83_v41 = vsel %vm46_vm0, %v81_v38, 0.0 }
  0xad   :  { %62 = vst.msk [vmem:[#allocation2] sm:$0xf] %vm34_vm1, %v60_v37  ;;  %v84_v42 = vadd.f32 %v83_v41, %v82_v36 }
  0xae   :  { %v110_v43 = vadd.f32 %v109_v39, %v108_v35 }
  0xaf   :  { %v85_v44 = vadd.f32 %v84_v42, %v63_v40 }
  0xb0   :  { %131 = vpush %v110_v43 }
  0xb1   :  { %86 = vst.msk [vmem:[#allocation3] sm:$0xf] %vm34_vm1, %v85_v44 }
  0xb4   :  { %v90_v45 = vld [vmem:[#allocation2] sm:$0xf] }
  0xb5   :  { %v91_v46 = vmul.f32 0.001953125, %v90_v45 }
  0xb7   :  { %v94_v49 = vmul.f32 %v91_v46, %v91_v46 }
  0xb8   :  { %v92_v47 = vld [vmem:[#allocation3] sm:$0xf] }
  0xb9   :  { %v93_v48 = vmul.f32 0.001953125, %v92_v47 }
  0xbb   :  { %v95_v50 = vsub.f32 %v93_v48, %v94_v49 }
  0xbd   :  { %v96_v51 = vmax.f32 %v95_v50, 0.0 }
  0xbf   :  { %v99_v52 = vadd.f32 1e-05, %v96_v51 }
  0xc1   :  { %139 = vrsqrt.f32 %v99_v52 }
  0xcb   :  { %v140_v54 = vpop.eup %139 }
  0xcc   :  { %v115_v55 = vmul.f32 %v140_v54, %v211_v0 }
  0xce   :  { %v118_v56 = vmul.f32 %v115_v55, %v91_v46 }
  0xd0   :  { %v119_v60 = vsub.f32 %v98_v57, %v118_v56 }
  0xe1   :  { %s132_s0 = spop %131 }
  0xe2   :  { %v112_v53 = vstv %s132_s0 }
  0xe3   :  { %141 = vrcp.f32 %v112_v53 }
  0xed   :  { %v142_v58 = vpop.eup %141 }
  0xee   :  { %v114_v59 = vmul.f32 %v142_v58, %v101_v3 }
  0xf0   :  { %v116_v61 = vmul.f32 %v115_v55, %v114_v59  ;;  %v120_v62 = vmul.f32 %v119_v60, %v114_v59 }
  0xf2   :  { %117 = vst.msk [vmem:[%s250_s3] sm:$0xf] %vm34_vm1, %v116_v61  ;;  %121 = vst.msk [vmem:[%s251_s4] sm:$0xf] %vm34_vm1, %v120_v62 }
  0xf3   :  { %130 = vsyncpa [#allocation5], 1 }

</bundles_post_ra>
